<compile_context>
chip_gen: v7x
topology: tpu7x:2x2x1
jax: 0.10.0
libtpu: 0.0.40
codegen_flags: <defaults>
</compile_context>

<pallas_src>
import jax
import jax.numpy as jnp
from jax.experimental import pallas as pl
from jax.experimental.pallas import tpu as pltpu


def _round_up(a, m):
    return (a + m - 1) // m * m


def rbf_act_kernel(x_ref, c_ref, coef_ref, act_ref, acc_ref):
    # x_ref   : (1, C, TP)   pixel tile of the current batch element
    # c_ref   : (C, R, TP)   channel-major pixel tile of the RBF centers
    # coef_ref: (R, 1)       -1 / (2 * sigma^2), precomputed in the wrapper
    # act_ref : (1, R, 1)    per-batch RBF activations (written at last tile)
    # acc_ref : (R, TP)      running partial-sum accumulator (VMEM scratch)
    p = pl.program_id(1)

    @pl.when(p == 0)
    def _():
        acc_ref[...] = jnp.zeros_like(acc_ref)

    num_c = c_ref.shape[0]
    x = x_ref[0]                                   # (C, TP)

    # Squared distance over channels; C is tiny -> static unroll, pure VPU.
    d = None
    for c in range(num_c):
        diff = c_ref[c] - x[c:c + 1, :]            # (R, TP)
        sq = diff * diff
        d = sq if d is None else d + sq

    # exp(d * (-1/(2 sigma^2))): divide folded into a multiply, one EUP exp.
    acc_ref[...] += jnp.exp(d * coef_ref[...])     # (R, TP)

    @pl.when(p == pl.num_programs(1) - 1)
    def _():
        # Single cross-lane reduce per batch element (XLU, once).
        act_ref[0] = jnp.sum(acc_ref[...], axis=1, keepdims=True)   # (R, 1)


def fc_sigmoid_kernel(act_ref, wt_ref, b_ref, o_ref):
    # act_ref: (B_pad, R)  wt_ref: (R, TN)  b_ref: (1, TN)  o_ref: (B_pad, TN)
    out = jnp.dot(act_ref[...], wt_ref[...], preferred_element_type=jnp.float32)
    o_ref[...] = jax.nn.sigmoid(out + b_ref[...])


def image_enhancement_rbf_net(x, centers, log_sigmas, fc_w, fc_b,
                              *, tp_max=2048, tn_max=2048):
    """x: (B, C, H, W) float32. Returns (B, C, H, W) float32."""
    B, C, H, W = x.shape
    R = centers.shape[0]
    P = H * W
    OUT = C * P

    # ---------------- phase 1: RBF activations -> (B, R) ----------------
    TP = min(tp_max, _round_up(P, 128))
    P_pad = _round_up(P, TP)
    n_p = P_pad // TP

    x2 = x.reshape(B, C, P).astype(jnp.float32)
    c_cm = jnp.transpose(centers.reshape(R, C, P).astype(jnp.float32),
                         (1, 0, 2))                               # (C, R, P)
    if P_pad != P:
        # Padded pixels: huge x, zero centers -> d is huge -> exp(-huge) == 0.
        x2 = jnp.pad(x2, ((0, 0), (0, 0), (0, P_pad - P)),
                     constant_values=1e6)
        c_cm = jnp.pad(c_cm, ((0, 0), (0, 0), (0, P_pad - P)),
                       constant_values=0.0)
    coef = (-0.5 * jnp.exp(-2.0 * log_sigmas.astype(jnp.float32))).reshape(R, 1)

    r8 = _round_up(R, 8)
    need1 = (2 * C * r8 * TP        # double-buffered centers tile
             + 2 * 8 * TP           # double-buffered x tile (C padded to 8)
             + r8 * TP              # accumulator scratch
             + 4 * r8 * 128) * 4    # coef / act output (tiny)
    vmem1 = int(min(max(2 * need1, 16 << 20), 64 << 20))

    cost1 = pl.CostEstimate(
        flops=int(B * R * P_pad * (3 * C + 2)),
        transcendentals=int(B * R * P_pad),
        bytes_accessed=int(4 * (B * C * R * P_pad + B * C * P_pad + B * R + R)))

    act3 = pl.pallas_call(
        rbf_act_kernel,
        out_shape=jax.ShapeDtypeStruct((B, R, 1), jnp.float32),
        grid_spec=pltpu.PrefetchScalarGridSpec(
            num_scalar_prefetch=0,
            grid=(B, n_p),
            in_specs=[
                pl.BlockSpec((1, C, TP), lambda b, p: (b, 0, p)),   # x tile
                pl.BlockSpec((C, R, TP), lambda b, p: (0, 0, p)),   # centers
                pl.BlockSpec((R, 1), lambda b, p: (0, 0)),          # -1/(2s^2)
            ],
            out_specs=pl.BlockSpec((1, R, 1), lambda b, p: (b, 0, 0)),
            scratch_shapes=[pltpu.VMEM((R, TP), jnp.float32)],
        ),
        compiler_params=pltpu.CompilerParams(
            dimension_semantics=("parallel", "arbitrary"),
            vmem_limit_bytes=vmem1),
        cost_estimate=cost1,
    )(x2, c_cm, coef)
    act = act3.reshape(B, R)

    # -------- phase 2: batched fc + sigmoid, lane-dense OUT tiles --------
    TN = min(tn_max, _round_up(OUT, 128))
    OUT_pad = _round_up(OUT, TN)
    n_out = OUT_pad // TN
    B_pad = _round_up(B, 8)

    wt = jnp.transpose(fc_w.astype(jnp.float32))          # (R, OUT)
    b2 = fc_b.astype(jnp.float32).reshape(1, OUT)
    if OUT_pad != OUT:
        # Zero-padded columns are sliced off below (sigmoid(0) never leaks).
        wt = jnp.pad(wt, ((0, 0), (0, OUT_pad - OUT)))
        b2 = jnp.pad(b2, ((0, 0), (0, OUT_pad - OUT)))
    act_p = act if B_pad == B else jnp.pad(act, ((0, B_pad - B), (0, 0)))

    r128 = _round_up(R, 128)
    need2 = (2 * r8 * TN + 2 * 8 * TN + 2 * B_pad * TN + 2 * B_pad * r128) * 4
    vmem2 = int(min(max(2 * need2, 16 << 20), 64 << 20))

    cost2 = pl.CostEstimate(
        flops=int(2 * B_pad * R * OUT_pad),
        transcendentals=int(B_pad * OUT_pad),
        bytes_accessed=int(4 * (R * OUT_pad + B_pad * R + OUT_pad
                                + B_pad * OUT_pad)))

    out = pl.pallas_call(
        fc_sigmoid_kernel,
        out_shape=jax.ShapeDtypeStruct((B_pad, OUT_pad), jnp.float32),
        grid_spec=pltpu.PrefetchScalarGridSpec(
            num_scalar_prefetch=0,
            grid=(n_out,),
            in_specs=[
                pl.BlockSpec((B_pad, R), lambda j: (0, 0)),   # activations
                pl.BlockSpec((R, TN), lambda j: (0, j)),      # fc weight^T
                pl.BlockSpec((1, TN), lambda j: (0, j)),      # fc bias
            ],
            out_specs=pl.BlockSpec((B_pad, TN), lambda j: (0, j)),
        ),
        compiler_params=pltpu.CompilerParams(
            dimension_semantics=("parallel",),
            vmem_limit_bytes=vmem2),
        cost_estimate=cost2,
    )(act_p, wt, b2)

    return out[:B, :OUT].reshape(B, C, H, W)


def reference_forward(x, centers, log_sigmas, fc_w, fc_b):
    """Pure-JAX replica of the PyTorch forward for verification."""
    B, C, H, W = x.shape
    R = centers.shape[0]
    xr = x.reshape(B, C, -1)
    cr = centers.reshape(R, C, -1)
    diff = xr[:, None, :, :] - cr[None, :, :, :]       # (B, R, C, P)
    d = jnp.sum(diff ** 2, axis=2)                     # (B, R, P)
    sig2 = jnp.exp(2.0 * log_sigmas)[None, :, None]    # (1, R, 1)
    act = jnp.sum(jnp.exp(-d / (2.0 * sig2)), axis=2)  # (B, R)
    out = act @ fc_w.T + fc_b                          # (B, OUT)
    return jax.nn.sigmoid(out.reshape(B, C, H, W))


if __name__ == "__main__":
    # Small shapes consistent with the module (scaled down from 256/178x218/3).
    B, C, H, W = 2, 3, 16, 16
    R = 32                    # num_rbf_neurons
    OUT = C * H * W           # fc output features

    key = jax.random.PRNGKey(0)
    k_x, k_c, k_ls, k_w, k_b = jax.random.split(key, 5)

    x = jax.random.normal(k_x, (B, C, H, W), dtype=jnp.float32)

    centers = jax.random.normal(k_c, (R, C, H, W), dtype=jnp.float32)
    log_sigmas = 0.05 * jax.random.normal(k_ls, (R,), dtype=jnp.float32)
    bound = 1.0 / jnp.sqrt(jnp.float32(R))
    fc_w = jax.random.uniform(k_w, (OUT, R), minval=-bound, maxval=bound,
                              dtype=jnp.float32)
    fc_b = jax.random.uniform(k_b, (OUT,), minval=-bound, maxval=bound,
                              dtype=jnp.float32)

    y = image_enhancement_rbf_net(x, centers, log_sigmas, fc_w, fc_b)
    y = jax.block_until_ready(y)

    y_ref = reference_forward(x, centers, log_sigmas, fc_w, fc_b)
    y_ref = jax.block_until_ready(y_ref)

    assert y.shape == (B, C, H, W)
    assert jnp.allclose(y, y_ref, atol=1e-4, rtol=1e-4), (
        float(jnp.max(jnp.abs(y - y_ref))))

    print("KERNEL_OK")
</pallas_src>

<mosaic_0001>
module attributes {stable_mosaic.version = 11 : i64} {
  func.func @rbf_act_kernel(%arg0: i32, %arg1: i32, %arg2: memref<1x3x256xf32, #tpu.memory_space<vmem>>, %arg3: memref<3x32x256xf32, #tpu.memory_space<vmem>>, %arg4: memref<32x1xf32, #tpu.memory_space<vmem>>, %arg5: memref<1x32x1xf32, #tpu.memory_space<vmem>>, %arg6: memref<32x256xf32, #tpu.memory_space<vmem>>) attributes {dimension_semantics = [#tpu.dimension_semantics<parallel>, #tpu.dimension_semantics<arbitrary>], iteration_bounds = array<i64: 2, 1>, scalar_prefetch = 0 : i64, scratch_operands = 1 : i64, tpu.core_type = #tpu.core_type<tc>, window_params = [{transform_indices = @transform_0, window_bounds = array<i64: 1, 3, 256>}, {transform_indices = @transform_1, window_bounds = array<i64: 3, 32, 256>}, {pipeline_mode = #tpu.pipeline_mode<synchronous>, transform_indices = @transform_2, window_bounds = array<i64: 32, 1>}, {transform_indices = @transform_3, window_bounds = array<i64: 1, 32, 1>}]} {
    %c0_i32 = arith.constant 0 : i32
    %0 = arith.cmpi eq, %arg1, %c0_i32 : i32
    %1 = arith.extui %0 : i1 to i32
    %c0_i32_0 = arith.constant 0 : i32
    %2 = arith.cmpi ne, %1, %c0_i32_0 : i32
    scf.if %2 {
      %cst = arith.constant 0.000000e+00 : f32
      %35 = vector.broadcast %cst : f32 to vector<32x256xf32>
      %c0_18 = arith.constant 0 : index
      %c0_19 = arith.constant 0 : index
      %36 = vector.load %arg6[%c0_18, %c0_19] : memref<32x256xf32, #tpu.memory_space<vmem>>, vector<32x256xf32>
      tpu.vector_store %arg6[%c0_18, %c0_19], %35 {strides = array<i32>} : memref<32x256xf32, #tpu.memory_space<vmem>>, vector<32x256xf32>,
    } else {
    }
    %c0 = arith.constant 0 : index
    %c0_1 = arith.constant 0 : index
    %c0_2 = arith.constant 0 : index
    %3 = vector.load %arg2[%c0, %c0_1, %c0_2] : memref<1x3x256xf32, #tpu.memory_space<vmem>>, vector<1x3x256xf32>
    %4 = vector.shape_cast %3 : vector<1x3x256xf32> to vector<3x256xf32>
    %c0_3 = arith.constant 0 : index
    %c0_4 = arith.constant 0 : index
    %c0_5 = arith.constant 0 : index
    %5 = vector.load %arg3[%c0_3, %c0_4, %c0_5] : memref<3x32x256xf32, #tpu.memory_space<vmem>>, vector<1x32x256xf32>
    %6 = vector.shape_cast %5 : vector<1x32x256xf32> to vector<32x256xf32>
    %7 = vector.extract_strided_slice %4 {offsets = [0, 0], sizes = [1, 256], strides = [1, 1]} : vector<3x256xf32> to vector<1x256xf32>
    %8 = vector.broadcast %7 : vector<1x256xf32> to vector<32x256xf32>
    %9 = arith.subf %6, %8 : vector<32x256xf32>
    %10 = arith.mulf %9, %9 : vector<32x256xf32>
    %c1 = arith.constant 1 : index
    %c0_6 = arith.constant 0 : index
    %c0_7 = arith.constant 0 : index
    %11 = vector.load %arg3[%c1, %c0_6, %c0_7] : memref<3x32x256xf32, #tpu.memory_space<vmem>>, vector<1x32x256xf32>
    %12 = vector.shape_cast %11 : vector<1x32x256xf32> to vector<32x256xf32>
    %13 = vector.extract_strided_slice %4 {offsets = [1, 0], sizes = [1, 256], strides = [1, 1]} : vector<3x256xf32> to vector<1x256xf32>
    %14 = vector.broadcast %13 : vector<1x256xf32> to vector<32x256xf32>
    %15 = arith.subf %12, %14 : vector<32x256xf32>
    %16 = arith.mulf %15, %15 : vector<32x256xf32>
    %17 = arith.addf %10, %16 : vector<32x256xf32>
    %c2 = arith.constant 2 : index
    %c0_8 = arith.constant 0 : index
    %c0_9 = arith.constant 0 : index
    %18 = vector.load %arg3[%c2, %c0_8, %c0_9] : memref<3x32x256xf32, #tpu.memory_space<vmem>>, vector<1x32x256xf32>
    %19 = vector.shape_cast %18 : vector<1x32x256xf32> to vector<32x256xf32>
    %20 = vector.extract_strided_slice %4 {offsets = [2, 0], sizes = [1, 256], strides = [1, 1]} : vector<3x256xf32> to vector<1x256xf32>
    %21 = vector.broadcast %20 : vector<1x256xf32> to vector<32x256xf32>
    %22 = arith.subf %19, %21 : vector<32x256xf32>
    %23 = arith.mulf %22, %22 : vector<32x256xf32>
    %24 = arith.addf %17, %23 : vector<32x256xf32>
    %c0_10 = arith.constant 0 : index
    %c0_11 = arith.constant 0 : index
    %25 = vector.load %arg6[%c0_10, %c0_11] : memref<32x256xf32, #tpu.memory_space<vmem>>, vector<32x256xf32>
    %c0_12 = arith.constant 0 : index
    %c0_13 = arith.constant 0 : index
    %26 = vector.load %arg4[%c0_12, %c0_13] : memref<32x1xf32, #tpu.memory_space<vmem>>, vector<32x1xf32>
    %27 = vector.broadcast %26 : vector<32x1xf32> to vector<32x256xf32>
    %28 = arith.mulf %24, %27 : vector<32x256xf32>
    %29 = math.exp %28 : vector<32x256xf32>
    %30 = arith.addf %25, %29 : vector<32x256xf32>
    %c0_14 = arith.constant 0 : index
    %c0_15 = arith.constant 0 : index
    %31 = vector.load %arg6[%c0_14, %c0_15] : memref<32x256xf32, #tpu.memory_space<vmem>>, vector<32x256xf32>
    tpu.vector_store %arg6[%c0_14, %c0_15], %30 {strides = array<i32>} : memref<32x256xf32, #tpu.memory_space<vmem>>, vector<32x256xf32>,
    %c0_i32_16 = arith.constant 0 : i32
    %32 = arith.cmpi eq, %arg1, %c0_i32_16 : i32
    %33 = arith.extui %32 : i1 to i32
    %c0_i32_17 = arith.constant 0 : i32
    %34 = arith.cmpi ne, %33, %c0_i32_17 : i32
    scf.if %34 {
      %c0_18 = arith.constant 0 : index
      %c0_19 = arith.constant 0 : index
      %35 = vector.load %arg6[%c0_18, %c0_19] : memref<32x256xf32, #tpu.memory_space<vmem>>, vector<32x256xf32>
      %cst = arith.constant dense<0.000000e+00> : vector<32xf32>
      %36 = vector.multi_reduction <add>, %35, %cst [1] : vector<32x256xf32> to vector<32xf32>
      %37 = vector.shape_cast %36 : vector<32xf32> to vector<32x1xf32>
      %c0_20 = arith.constant 0 : index
      %c0_21 = arith.constant 0 : index
      %c0_22 = arith.constant 0 : index
      %38 = vector.load %arg5[%c0_20, %c0_21, %c0_22] : memref<1x32x1xf32, #tpu.memory_space<vmem>>, vector<1x32x1xf32>
      %39 = vector.shape_cast %38 : vector<1x32x1xf32> to vector<32x1xf32>
      %40 = vector.shape_cast %37 : vector<32x1xf32> to vector<1x32x1xf32>
      tpu.vector_store %arg5[%c0_20, %c0_21, %c0_22], %40 {strides = array<i32>} : memref<1x32x1xf32, #tpu.memory_space<vmem>>, vector<1x32x1xf32>,
    } else {
    }
    return
  }
  func.func @transform_0(%arg0: i32, %arg1: i32) -> (i32, i32, i32) {
    %c0_i32 = arith.constant 0 : i32
    %c0_i32_0 = arith.constant 0 : i32
    return %arg0, %c0_i32, %arg1 : i32, i32, i32
  }
  func.func @transform_1(%arg0: i32, %arg1: i32) -> (i32, i32, i32) {
    %c0_i32 = arith.constant 0 : i32
    %c0_i32_0 = arith.constant 0 : i32
    %c0_i32_1 = arith.constant 0 : i32
    return %c0_i32, %c0_i32_0, %arg1 : i32, i32, i32
  }
  func.func @transform_2(%arg0: i32, %arg1: i32) -> (i32, i32) {
    %c0_i32 = arith.constant 0 : i32
    %c0_i32_0 = arith.constant 0 : i32
    %c0_i32_1 = arith.constant 0 : i32
    return %c0_i32, %c0_i32_0 : i32, i32
  }
  func.func @transform_3(%arg0: i32, %arg1: i32) -> (i32, i32, i32) {
    %c0_i32 = arith.constant 0 : i32
    %c0_i32_0 = arith.constant 0 : i32
    %c0_i32_1 = arith.constant 0 : i32
    return %arg0, %c0_i32, %c0_i32_0 : i32, i32, i32
  }
}

</mosaic_0001>

<bundles_post_ra>
// kernel: tpu_custom_call.1
= control target key start
LH: loop header
LB: loop body
LE: loop exit
PB: predicated region body
PF: predicated region fallthrough
CT: control target
= control target key end

     0   :  { %8 = vsyncpa [#allocation4], 0  ;;  %s716_s12 = smov 0   ;;  %s718_s13 = smov 0   ;;  %s814_s0 = inlined_call_operand.vmem [shape: f32[2,3,256], index: 0, kind: input, shape index: {}]   ;;  %s815_s1 = inlined_call_operand.hbm [shape: f32[3,32,256], index: 1, kind: input, shape index: {}]   ;;  %s816_s2 = inlined_call_operand.vmem [shape: f32[32,1], index: 2, kind: input, shape index: {}]   ;;  %s817_s3 = inlined_call_operand.vmem [shape: f32[2,32,1], index: 3, kind: output, shape index: {}]  }
   0x1   :  { %s720_s14 = smov 0  }
   0x2 LB: > { %s565_s15 = sadd.s32 4294967295, %s690_s14   ;;  %s26_s16 = sadd.s32 1, %s686_s13  ;;  %s690_s14 = sphi %s720_s14, %s14_s14   ;;  %s686_s13 = sphi %s718_s13, %s827_s13   ;;  %s682_s12 = sphi %s716_s12, %s826_s12  }
   0x3   : > { %p28_p0 = scmp.ge.s32.totalorder %s26_s16, 2  ;;  %p567_p1 = scmp.ge.s32.totalorder %s690_s14, 1 }
   0x4   : > { %p132_p2 = scmp.lt.s32.totalorder %s690_s14, 3  ;;  %p741_p4 = scmp.eq.s32.totalorder %s565_s15, 0 }
   0x5   : > { %s829_s16 = smov (%p28_p0, %s26_s16), 0  ;;  %s692_s19 = smov [#allocation3]  }
   0x6   : > { %p737_p3 = pnand %p567_p1, %p132_p2  ;;  %s147_s20 = sshll.u32 %s692_s19, 4  ;;  %s148_s20 = int_to_ptr.vmem [resolvable:$true] %s147_s20 }
   0x7   : > { %s822_s18 = scalar_select %p741_p4, 1, 0 }
   0x8   : > { %s821_s17 = scalar_select %p737_p3, 1, 0 }
   0x9   : > { %p584_p5 = pneg %p737_p3  ;;  %s636_s24 = scalar_lea.hbm %s815_s1, 3072 }
   0xa   : > { %p637_p7 = scmp.ne.s32.totalorder %s815_s1, %s636_s24  ;;  %p643_p11 = scmp.lt.u32.totalorder %s636_s24, %s815_s1 }
   0xb   : > { %p749_p6 = pnand %p741_p4, %p584_p5 }
   0xd   : > { %p638_p8 = pneg %p749_p6 }
   0xf   : > { %p639_p9 = pnand %p638_p8, %p637_p7 }
  0x11   : > { %p640_p10 = pneg %p639_p9 }
  0x13   : > { %p645_p12 = pnand %p643_p11, %p640_p10 }
  0x15   : > { %648 = shalt.err (!%p645_p12)
}
  0x16   : > { %s649_s29 = scalar_lea.vmem %s148_s20, 3072  ;;  %p657_p2 = scmp.lt.s32.totalorder %s148_s20, %s148_s20 }
  0x17   : > { %p650_p13 = scmp.ne.s32.totalorder %s148_s20, %s649_s29  ;;  %p658_p5 = scmp.lt.s32.totalorder %s649_s29, %s649_s29 }
  0x19   : > { %p652_p0 = pnand %p650_p13, %p638_p8  ;;  %p659_p4 = por %p658_p5, %p657_p2 }
  0x1b   : > { %p653_p1 = pneg %p652_p0 }
  0x1d   : > { %p660_p3 = pnand %p659_p4, %p653_p1 }
  0x1f   : > { %663 = shalt.err (!%p660_p3)
}
  0x20   : > { %s693_s30 = smov 256   ;;  %s694_s4 = smov 16  }
  0x21   : > { %587 = dma.hbm_to_vmem [thread:$0]  (!%p749_p6), %s815_s1, 3072, %s148_s20, [#allocation4], %s693_s30, %s693_s30, %s694_s4  }
  0x22   : > { %p824_p7 = scmp.ne.s32.totalorder %s821_s17, 0 }
  0x23   : > { %p825_p9 = scmp.ne.s32.totalorder (!%p824_p7), %s822_s18, 0 }
  0x24   : > { %179 = sbr.rel (%p824_p7) target bundleno = 345 (0x159), region = 32 }
  0x2b   : > { %677 = dma.done.wait (%p825_p9), [#allocation4], 3072  }
  0x2c   : > { %679 = vsyncadd (%p825_p9), [#allocation4], 4294964224  ;;  %v695_v0 = vmov 0   ;;  %v391_v1 = vld [vmem:[%s816_s2 + $0x10] sm:$0xff]  ;;  %v389_v2 = vld [vmem:[%s816_s2] sm:$0xff]  ;;  %p208_p3 = scmp.lt.s32.totalorder %s682_s12, 1  ;;  %v245_v5 = vlaneseq }
  0x2d   : > { %619 = vset.pattern.permute.xlu1 %v695_v0  ;;  %618 = vset.pattern.permute.xlu0 %v695_v0  ;;  %v392_v3 = vld [vmem:[%s816_s2 + $0x18] sm:$0xff]  ;;  %v390_v4 = vld [vmem:[%s816_s2 + $0x8] sm:$0xff]  ;;  %v240_v20 = vld [vmem:[#allocation3 + $0x20] sm:$0xff]  ;;  %vm476_vm0 = vcmask 7168  }
  0x2e   : > { %405 = vperm.xlu1 %619, %v391_v1   ;;  %395 = vperm.xlu0 %618, %v389_v2   ;;  %s831_s12 = smov (!%p208_p3, %s682_s12), 1  ;;  %v246_v6 = vshrl.u32 %v245_v5, 7  ;;  %v241_v21 = vld [vmem:[#allocation3 + $0x28] sm:$0xff]  ;;  %v284_v22 = vld [vmem:[#allocation3 + $0x60] sm:$0xff]  ;;  %v242_v46 = vld [vmem:[#allocation3 + $0x30] sm:$0xff] }
  0x2f   : > { %s578_s19 = sshll.u32 %s831_s12, 3  ;;  %v285_v24 = vld [vmem:[#allocation3 + $0x68] sm:$0xff]  ;;  %v335_v26 = vld [vmem:[#allocation3 + $0xa0] sm:$0xff]  ;;  %v286_v51 = vld [vmem:[#allocation3 + $0x70] sm:$0xff]  ;;  %s579_s23 = sshll.u32 %s831_s12, 5 }
  0x30   : > { %s215_s22 = scalar_lea.vmem %s814_s0, %s578_s19  ;;  %v247_v7 = vsub.s32 0, %v246_v6  ;;  %v290_v8 = vsub.s32 1, %v246_v6  ;;  %v251_v9 = vsub.s32 4, %v246_v6  ;;  %v294_v10 = vsub.s32 5, %v246_v6  ;;  %v336_v27 = vld [vmem:[#allocation3 + $0xa8] sm:$0xff]  ;;  %v236_v32 = vld [vmem:[#allocation3] sm:$0xff]  ;;  %s222_s26 = scalar_lea.vmem %s817_s3, %s579_s23 }
  0x31   : > { %v341_v11 = vsub.s32 2, %v246_v6  ;;  %v345_v12 = vsub.s32 6, %v246_v6  ;;  %v235_v13 = vld [vmem:[%s215_s22] sm:$0x77]  ;;  %v237_v35 = vld [vmem:[#allocation3 + $0x8] sm:$0xff]  ;;  %v238_v52 = vld [vmem:[#allocation3 + $0x10] sm:$0xff] }
  0x32   : > { %410 = vperm.xlu1 %619, %v392_v3   ;;  %400 = vperm.xlu0 %618, %v390_v4   ;;  %v248_v14 = vrot.slane %v235_v13, %v247_v7  ;;  %v291_v15 = vrot.slane %v235_v13, %v290_v8  ;;  %v252_v16 = vrot.slane %v235_v13, %v251_v9  ;;  %v280_v40 = vld [vmem:[#allocation3 + $0x40] sm:$0xff]  ;;  %v281_v41 = vld [vmem:[#allocation3 + $0x48] sm:$0xff]  ;;  %v282_v53 = vld [vmem:[#allocation3 + $0x50] sm:$0xff] }
  0x33   : > { %v295_v17 = vrot.slane %v235_v13, %v294_v10  ;;  %v342_v18 = vrot.slane %v235_v13, %v341_v11  ;;  %v346_v19 = vrot.slane %v235_v13, %v345_v12  ;;  %v331_v44 = vld [vmem:[#allocation3 + $0x80] sm:$0xff]  ;;  %v332_v45 = vld [vmem:[#allocation3 + $0x88] sm:$0xff]  ;;  %v243_v58 = vld [vmem:[#allocation3 + $0x38] sm:$0xff] }
  0x34   : > { %v258_v23 = vrot.slane %v248_v14, %v247_v7  ;;  %v301_v25 = vrot.slane %v291_v15, %v290_v8  ;;  %v262_v28 = vrot.slane %v252_v16, %v247_v7  ;;  %v287_v63 = vld [vmem:[#allocation3 + $0x78] sm:$0xff]  ;;  %v337_v4 = vld [vmem:[#allocation3 + $0xb0] sm:$0xff] }
  0x35   : > { %v305_v29 = vrot.slane %v295_v17, %v290_v8  ;;  %v352_v30 = vrot.slane %v342_v18, %v341_v11  ;;  %v795_v31 = vrot.slane %v346_v19, %v341_v11  ;;  %v239_v0 = vld [vmem:[#allocation3 + $0x18] sm:$0xff]  ;;  %v333_v11 = vld [vmem:[#allocation3 + $0x90] sm:$0xff] }
  0x36   : > { %v267_v33 = vsub.f32 %v240_v20, %v258_v23  ;;  %v310_v34 = vsub.f32 %v284_v22, %v301_v25  ;;  %v268_v36 = vsub.f32 %v241_v21, %v262_v28  ;;  %v263_v42 = vsub.f32 %v236_v32, %v258_v23  ;;  %v283_v1 = vld [vmem:[#allocation3 + $0x58] sm:$0xff] }
  0x37   : > { %v311_v37 = vsub.f32 %v285_v24, %v305_v29  ;;  %v361_v38 = vsub.f32 %v335_v26, %v352_v30  ;;  %v362_v39 = vsub.f32 %v336_v27, %v795_v31  ;;  %v264_v43 = vsub.f32 %v237_v35, %v262_v28  ;;  %v338_v14 = vld [vmem:[#allocation3 + $0xb8] sm:$0xff] }
  0x38   : > { %v275_v47 = vmul.f32 %v267_v33, %v267_v33  ;;  %v318_v48 = vmul.f32 %v310_v34, %v310_v34  ;;  %v306_v49 = vsub.f32 %v280_v40, %v301_v25  ;;  %v307_v50 = vsub.f32 %v281_v41, %v305_v29  ;;  %v334_v21 = vld [vmem:[#allocation3 + $0x98] sm:$0xff] }
  0x39   : > { %v276_v54 = vmul.f32 %v268_v36, %v268_v36  ;;  %v319_v55 = vmul.f32 %v311_v37, %v311_v37  ;;  %v369_v56 = vmul.f32 %v361_v38, %v361_v38  ;;  %v370_v57 = vmul.f32 %v362_v39, %v362_v39 }
  0x3a   : > { %v271_v59 = vmul.f32 %v263_v42, %v263_v42  ;;  %v357_v60 = vsub.f32 %v331_v44, %v352_v30  ;;  %v358_v61 = vsub.f32 %v332_v45, %v795_v31  ;;  %v269_v62 = vsub.f32 %v242_v46, %v258_v23 }
  0x3b   : > { %v272_v2 = vmul.f32 %v264_v43, %v264_v43  ;;  %v312_v3 = vsub.f32 %v286_v51, %v301_v25  ;;  %v265_v5 = vsub.f32 %v238_v52, %v258_v23  ;;  %v308_v6 = vsub.f32 %v282_v53, %v301_v25 }
  0x3c   : > { %v326_v7 = vadd.f32 %v318_v48, %v275_v47  ;;  %v314_v8 = vmul.f32 %v306_v49, %v306_v49  ;;  %v315_v9 = vmul.f32 %v307_v50, %v307_v50  ;;  %v270_v10 = vsub.f32 %v243_v58, %v262_v28 }
  0x3d   : > { %v327_v12 = vadd.f32 %v319_v55, %v276_v54  ;;  %v313_v13 = vsub.f32 %v287_v63, %v305_v29  ;;  %v266_v15 = vsub.f32 %v239_v0, %v262_v28  ;;  %v309_v16 = vsub.f32 %v283_v1, %v305_v29 }
  0x3e   : > { %v365_v17 = vmul.f32 %v357_v60, %v357_v60  ;;  %v366_v18 = vmul.f32 %v358_v61, %v358_v61  ;;  %v277_v19 = vmul.f32 %v269_v62, %v269_v62  ;;  %v363_v20 = vsub.f32 %v337_v4, %v352_v30 }
  0x3f   : > { %v320_v22 = vmul.f32 %v312_v3, %v312_v3  ;;  %v273_v24 = vmul.f32 %v265_v5, %v265_v5  ;;  %v316_v26 = vmul.f32 %v308_v6, %v308_v6  ;;  %v359_v23 = vsub.f32 %v333_v11, %v352_v30 }
  0x40   : > { %v322_v25 = vadd.f32 %v314_v8, %v271_v59  ;;  %v323_v27 = vadd.f32 %v315_v9, %v272_v2  ;;  %v278_v32 = vmul.f32 %v270_v10, %v270_v10  ;;  %v364_v33 = vsub.f32 %v338_v14, %v795_v31 }
  0x41   : > { %v321_v34 = vmul.f32 %v313_v13, %v313_v13  ;;  %v274_v35 = vmul.f32 %v266_v15, %v266_v15  ;;  %v317_v36 = vmul.f32 %v309_v16, %v309_v16  ;;  %v360_v28 = vsub.f32 %v334_v21, %v795_v31 }
  0x42   : > { %v328_v29 = vadd.f32 %v320_v22, %v277_v19  ;;  %v371_v37 = vmul.f32 %v363_v20, %v363_v20  ;;  %v324_v38 = vadd.f32 %v316_v26, %v273_v24  ;;  %v367_v39 = vmul.f32 %v359_v23, %v359_v23 }
  0x43   : > { %v377_v40 = vadd.f32 %v369_v56, %v326_v7  ;;  %v378_v41 = vadd.f32 %v370_v57, %v327_v12  ;;  %v373_v42 = vadd.f32 %v365_v17, %v322_v25  ;;  %v374_v43 = vadd.f32 %v366_v18, %v323_v27 }
  0x44   : > { %v329_v44 = vadd.f32 %v321_v34, %v278_v32  ;;  %v372_v30 = vmul.f32 %v364_v33, %v364_v33  ;;  %v325_v45 = vadd.f32 %v317_v36, %v274_v35  ;;  %v368_v46 = vmul.f32 %v360_v28, %v360_v28 }
  0x45   : > { %v379_v49 = vadd.f32 %v371_v37, %v328_v29  ;;  %v375_v50 = vadd.f32 %v367_v39, %v324_v38 }
  0x46   : > { %v380_v54 = vadd.f32 %v372_v30, %v329_v44  ;;  %v376_v55 = vadd.f32 %v368_v46, %v325_v45 }
  0xad   : > { %v406_v47 = vpop.permute.xlu1 %405  ;;  %v396_v48 = vpop.permute.xlu0 %395 }
  0xae   : > { %v417_v51 = vmul.f32 %v406_v47, %v377_v40  ;;  %v418_v52 = vmul.f32 %v406_v47, %v378_v41  ;;  %v413_v53 = vmul.f32 %v396_v48, %v373_v42  ;;  %v414_v31 = vmul.f32 %v396_v48, %v374_v43 }
  0xb0   : > { %v429_v58 = vmul.f32 1.442695, %v417_v51  ;;  %v431_v59 = vmul.f32 1.442695, %v418_v52  ;;  %v421_v56 = vmul.f32 1.442695, %v413_v53 }
  0xb1   : > { %v423_v57 = vmul.f32 1.442695, %v414_v31  ;;  %v411_v60 = vpop.permute.xlu1 %410  ;;  %v401_v61 = vpop.permute.xlu0 %400 }
  0xb2   : > { %620 = vpow2.f32 %v429_v58  ;;  %v419_v62 = vmul.f32 %v411_v60, %v379_v49  ;;  %v415_v63 = vmul.f32 %v401_v61, %v375_v50  ;;  %v420_v0 = vmul.f32 %v411_v60, %v380_v54 }
  0xb3   : > { %622 = vpow2.f32 %v431_v59  ;;  %v416_v1 = vmul.f32 %v401_v61, %v376_v55 }
  0xb4   : > { %624 = vpow2.f32 %v421_v56  ;;  %v425_v2 = vmul.f32 1.442695, %v415_v63  ;;  %v433_v4 = vmul.f32 1.442695, %v419_v62  ;;  %v435_v5 = vmul.f32 1.442695, %v420_v0 }
  0xb5   : > { %626 = vpow2.f32 %v423_v57  ;;  %v427_v3 = vmul.f32 1.442695, %v416_v1 }
  0xb6   : > { %628 = vpow2.f32 %v425_v2 }
  0xb7   : > { %630 = vpow2.f32 %v427_v3 }
  0xb8   : > { %632 = vpow2.f32 %v433_v4 }
  0xb9   : > { %634 = vpow2.f32 %v435_v5 }
  0xbc   : > { %v621_v6 = vpop.eup %620 }
  0xbd   : > { %v623_v7 = vpop.eup %622 }
  0xbe   : > { %v625_v8 = vpop.eup %624  ;;  %v470_v12 = vadd.f32 %v623_v7, %v621_v6 }
  0xbf   : > { %v627_v9 = vpop.eup %626 }
  0xc0   : > { %v464_v10 = vadd.f32 %v627_v9, %v625_v8  ;;  %v629_v11 = vpop.eup %628 }
  0xc1   : > { %v631_v13 = vpop.eup %630 }
  0xc2   : > { %465 = vadd.xlane.f32.xlu0 %v464_v10  ;;  %v633_v14 = vpop.eup %632  ;;  %v467_v15 = vadd.f32 %v631_v13, %v629_v11 }
  0xc3   : > { %v635_v16 = vpop.eup %634 }
  0xc4   : > { %468 = vadd.xlane.f32.xlu1 %v467_v15  ;;  %v473_v17 = vadd.f32 %v635_v16, %v633_v14 }
  0xc6   : > { %471 = vadd.xlane.f32.xlu0 %v470_v12 }
  0xca   : > { %474 = vadd.xlane.f32.xlu0 %v473_v17 }
 0x14f   : > { %v466_v18 = vpop.xlane.xlu0 %465 }
 0x150   : > { %477 = vst.msk [vmem:[%s222_s26] sm:$0xff] %vm476_vm0, %v466_v18 }
 0x151   : > { %v469_v19 = vpop.xlane.xlu1 %468 }
 0x152   : > { %478 = vst.msk [vmem:[%s222_s26 + $0x8] sm:$0xff] %vm476_vm0, %v469_v19 }
 0x153   : > { %v472_v20 = vpop.xlane.xlu0 %471 }
 0x154   : > { %479 = vst.msk [vmem:[%s222_s26 + $0x10] sm:$0xff] %vm476_vm0, %v472_v20 }
 0x157   : > { %v475_v21 = vpop.xlane.xlu0 %474 }
 0x158   : > { %480 = vst.msk [vmem:[%s222_s26 + $0x18] sm:$0xff] %vm476_vm0, %v475_v21 }
 0x159 PF: > { %s14_s14 = sadd.s32 1, %s690_s14   ;;  %s826_s12 = smov %s686_s13 }
 0x15a   : > { %p11_p4 = scmp.ge.s32.totalorder %s14_s14, 4   ;;  %s827_s13 = smov %s829_s16 }
 0x15c   :  { %13 = sbr.rel (!%p11_p4) target bundleno = 2 (0x2), region = 78 }
 0x163   :  { %502 = vsyncpa [#allocation4], 1 }
 0x164   :  { %504 = vsyncpa [#allocation4 + $0x1], 1 }

</bundles_post_ra>
